<compile_context>
chip_gen: v5e
topology: v5e:2x2
jax: 0.10.0
libtpu: 0.0.40
codegen_flags: <defaults>
</compile_context>

<pallas_src>
import functools
from itertools import chain, combinations_with_replacement

import numpy as np
import jax
import jax.numpy as jnp
from jax.experimental import pallas as pl
from jax.experimental.pallas import tpu as pltpu


_LANES = 128
_SUBLANES = 8


def _round_up(x: int, m: int) -> int:
    return ((x + m - 1) // m) * m


def _cdiv(a: int, b: int) -> int:
    return (a + b - 1) // b


def _make_combos(dim_aug: int, degree: int, include_bias: bool = True):
    """Static list of index tuples, identical ordering to the PyTorch module."""
    start = int(not include_bias)
    return [
        tuple(c)
        for c in chain.from_iterable(
            combinations_with_replacement(range(dim_aug), i)
            for i in range(start, degree + 1)
        )
    ]


def _poly_sinusoid_kernel(x_ref, o_ref, *, combos, combo_index, dim):
    # x_ref: (dim, rows_tile, 128) ; o_ref: (F, rows_tile, 128).
    # Batch is dense on (sublane, lane); every slab below is (rows_tile, 128).
    x = x_ref[...].astype(jnp.float32)            # (dim, rt, 128)
    sin_x = jnp.sin(x)                            # dense EUP
    cos_x = jnp.cos(x)
    slab_shape = x.shape[1:]

    def source(idx):
        # Static dispatch of augmented index -> dense slab of x / sin(x) / cos(x).
        which, row = divmod(idx, dim)
        return (x, sin_x, cos_x)[which][row]      # (rt, 128)

    out_dtype = o_ref.dtype
    # Fully static loop, unrolled at trace time (O(F) instructions: one VPU
    # multiply + one dense store per feature). For very large F a second
    # "arbitrary" grid axis over feature blocks could bound code size.
    for k, combo in enumerate(combos):
        if len(combo) == 0:
            v = jnp.ones(slab_shape, jnp.float32)          # bias
        elif len(combo) == 1:
            v = source(combo[0])
        else:
            # combinations_with_replacement ordering => the (d-1)-prefix is an
            # earlier feature: read it back from the output block instead of
            # keeping every prefix live (bounds VMEM/vreg pressure).
            prefix = o_ref[combo_index[combo[:-1]], :, :].astype(jnp.float32)
            v = prefix * source(combo[-1])
        o_ref[k, :, :] = v.astype(out_dtype)


def sparse_polynomial_sinusoid_tfm(x, dim: int, degree: int,
                                   include_bias: bool = True,
                                   *, feature_major: bool = False,
                                   vmem_block_budget_bytes: int = 16 << 20):
    """Pallas-backed equivalent of SparsePolynomialSinusoidTfm.forward."""
    combos = _make_combos(3 * dim, degree, include_bias)
    combo_index = {c: i for i, c in enumerate(combos)}
    num_features = len(combos)

    lead = x.shape[:-1]
    n = int(np.prod(lead)) if lead else 1
    x2d = x.reshape(n, dim)
    itemsize = int(jnp.dtype(x.dtype).itemsize)

    # ---- tiling: batch -> (rows, 128); rows_tile sized from F & VMEM budget.
    rows = max(_cdiv(n, _LANES), 1)
    bytes_per_row = _LANES * (
        2 * (dim + num_features) * itemsize      # double-buffered in/out blocks
        + 3 * dim * 4                            # f32 x / sin / cos temporaries
        + 4 * 4)                                 # transient slabs / headroom
    rows_max = max((vmem_block_budget_bytes // bytes_per_row)
                   // _SUBLANES * _SUBLANES, _SUBLANES)

    num_steps = max(_cdiv(rows, rows_max), 1)
    if num_steps == 1 and rows >= 16:
        num_steps = 2                            # let v7x's 2 TCs split the batch
    if num_steps > 1 and num_steps % 2 == 1:
        num_steps += 1                           # even split across TensorCores
    rows_tile = _round_up(_cdiv(rows, num_steps), _SUBLANES)
    padded_rows = rows_tile * num_steps
    n_pad = padded_rows * _LANES

    # Lane+sublane dense layout: (dim, padded_rows, 128).
    xt = x2d.T                                                   # (dim, n)
    if n_pad != n:
        xt = jnp.pad(xt, ((0, 0), (0, n_pad - n)))               # sin/cos safe
    xt = xt.reshape(dim, padded_rows, _LANES)

    n_mul = sum(1 for c in combos if len(c) >= 2)
    cost = pl.CostEstimate(
        flops=n_mul * n_pad,
        transcendentals=2 * dim * n_pad,
        bytes_accessed=(dim + num_features) * n_pad * itemsize,
    )

    out_t = pl.pallas_call(
        functools.partial(_poly_sinusoid_kernel, combos=combos,
                          combo_index=combo_index, dim=dim),
        out_shape=jax.ShapeDtypeStruct((num_features, padded_rows, _LANES),
                                       x.dtype),
        grid=(num_steps,),
        in_specs=[pl.BlockSpec((dim, rows_tile, _LANES), lambda i: (0, i, 0))],
        out_specs=pl.BlockSpec((num_features, rows_tile, _LANES),
                               lambda i: (0, i, 0)),
        compiler_params=pltpu.CompilerParams(
            dimension_semantics=("parallel",),
            vmem_limit_bytes=32 << 20),          # <= physical VMEM on all gens
        cost_estimate=cost,
    )(xt)

    flat = out_t.reshape(num_features, n_pad)[:, :n]             # (F, n)
    if feature_major:
        # Feature-major layout: skips the output transpose entirely for
        # downstream contractions that can consume (F, ...).
        return flat.reshape(num_features, *lead)
    # Module semantics: (..., num_features). Single XLA transpose outside the
    # kernel keeps all in-kernel stores dense.
    return flat.T.reshape(*lead, num_features)


def _reference(x, dim, degree, include_bias=True):
    """Pure-JAX reference mirroring the PyTorch forward for validation."""
    combos = _make_combos(3 * dim, degree, include_bias)
    x_in = jnp.concatenate([x, jnp.sin(x), jnp.cos(x)], axis=-1)
    cols = []
    for combo in combos:
        if len(combo) == 0:
            cols.append(jnp.ones(x.shape[:-1], dtype=x.dtype))
        else:
            f = x_in[..., combo[0]]
            for ind in combo[1:]:
                f = f * x_in[..., ind]
            cols.append(f)
    return jnp.stack(cols, axis=-1)


if __name__ == "__main__":
    dim, degree = 2, 2          # module config: SparsePolynomialSinusoidTfm(2, 2)
    key = jax.random.PRNGKey(0)
    x = jax.random.normal(key, (2, 4, dim), dtype=jnp.float32)   # (..., dim)

    out = sparse_polynomial_sinusoid_tfm(x, dim, degree)
    out = jax.block_until_ready(out)

    ref = _reference(x, dim, degree)
    assert out.shape == ref.shape, (out.shape, ref.shape)
    np.testing.assert_allclose(np.asarray(out), np.asarray(ref),
                               rtol=1e-5, atol=1e-5)

    # Also exercise the transpose-free feature-major path.
    out_fm = jax.block_until_ready(
        sparse_polynomial_sinusoid_tfm(x, dim, degree, feature_major=True))
    np.testing.assert_allclose(np.asarray(out_fm),
                               np.moveaxis(np.asarray(ref), -1, 0),
                               rtol=1e-5, atol=1e-5)
    print("KERNEL_OK")
</pallas_src>

<mosaic_0001>
module attributes {stable_mosaic.version = 11 : i64} {
  func.func @_poly_sinusoid_kernel(%arg0: i32, %arg1: memref<2x8x128xf32, #tpu.memory_space<vmem>>, %arg2: memref<28x8x128xf32, #tpu.memory_space<vmem>>) attributes {dimension_semantics = [#tpu.dimension_semantics<parallel>], iteration_bounds = array<i64: 1>, scalar_prefetch = 0 : i64, scratch_operands = 0 : i64, tpu.core_type = #tpu.core_type<tc>, window_params = [{transform_indices = @transform_0, window_bounds = array<i64: 2, 8, 128>}, {transform_indices = @transform_1, window_bounds = array<i64: 28, 8, 128>}]} {
    %c0 = arith.constant 0 : index
    %c0_0 = arith.constant 0 : index
    %c0_1 = arith.constant 0 : index
    %0 = vector.load %arg1[%c0, %c0_0, %c0_1] : memref<2x8x128xf32, #tpu.memory_space<vmem>>, vector<2x8x128xf32>
    %1 = math.sin %0 : vector<2x8x128xf32>
    %2 = math.cos %0 : vector<2x8x128xf32>
    %cst = arith.constant 1.000000e+00 : f32
    %3 = vector.broadcast %cst : f32 to vector<8x128xf32>
    %c0_2 = arith.constant 0 : index
    %c0_3 = arith.constant 0 : index
    %c0_4 = arith.constant 0 : index
    %4 = vector.load %arg2[%c0_2, %c0_3, %c0_4] : memref<28x8x128xf32, #tpu.memory_space<vmem>>, vector<1x8x128xf32>
    %5 = vector.shape_cast %4 : vector<1x8x128xf32> to vector<8x128xf32>
    %6 = vector.shape_cast %3 : vector<8x128xf32> to vector<1x8x128xf32>
    tpu.vector_store %arg2[%c0_2, %c0_3, %c0_4], %6 {strides = array<i32>} : memref<28x8x128xf32, #tpu.memory_space<vmem>>, vector<1x8x128xf32>,
    %7 = vector.extract_strided_slice %0 {offsets = [0, 0, 0], sizes = [1, 8, 128], strides = [1, 1, 1]} : vector<2x8x128xf32> to vector<1x8x128xf32>
    %8 = vector.shape_cast %7 : vector<1x8x128xf32> to vector<8x128xf32>
    %c1 = arith.constant 1 : index
    %c0_5 = arith.constant 0 : index
    %c0_6 = arith.constant 0 : index
    %9 = vector.load %arg2[%c1, %c0_5, %c0_6] : memref<28x8x128xf32, #tpu.memory_space<vmem>>, vector<1x8x128xf32>
    %10 = vector.shape_cast %9 : vector<1x8x128xf32> to vector<8x128xf32>
    %11 = vector.shape_cast %8 : vector<8x128xf32> to vector<1x8x128xf32>
    tpu.vector_store %arg2[%c1, %c0_5, %c0_6], %11 {strides = array<i32>} : memref<28x8x128xf32, #tpu.memory_space<vmem>>, vector<1x8x128xf32>,
    %12 = vector.extract_strided_slice %0 {offsets = [1, 0, 0], sizes = [1, 8, 128], strides = [1, 1, 1]} : vector<2x8x128xf32> to vector<1x8x128xf32>
    %13 = vector.shape_cast %12 : vector<1x8x128xf32> to vector<8x128xf32>
    %c2 = arith.constant 2 : index
    %c0_7 = arith.constant 0 : index
    %c0_8 = arith.constant 0 : index
    %14 = vector.load %arg2[%c2, %c0_7, %c0_8] : memref<28x8x128xf32, #tpu.memory_space<vmem>>, vector<1x8x128xf32>
    %15 = vector.shape_cast %14 : vector<1x8x128xf32> to vector<8x128xf32>
    %16 = vector.shape_cast %13 : vector<8x128xf32> to vector<1x8x128xf32>
    tpu.vector_store %arg2[%c2, %c0_7, %c0_8], %16 {strides = array<i32>} : memref<28x8x128xf32, #tpu.memory_space<vmem>>, vector<1x8x128xf32>,
    %17 = vector.extract_strided_slice %1 {offsets = [0, 0, 0], sizes = [1, 8, 128], strides = [1, 1, 1]} : vector<2x8x128xf32> to vector<1x8x128xf32>
    %18 = vector.shape_cast %17 : vector<1x8x128xf32> to vector<8x128xf32>
    %c3 = arith.constant 3 : index
    %c0_9 = arith.constant 0 : index
    %c0_10 = arith.constant 0 : index
    %19 = vector.load %arg2[%c3, %c0_9, %c0_10] : memref<28x8x128xf32, #tpu.memory_space<vmem>>, vector<1x8x128xf32>
    %20 = vector.shape_cast %19 : vector<1x8x128xf32> to vector<8x128xf32>
    %21 = vector.shape_cast %18 : vector<8x128xf32> to vector<1x8x128xf32>
    tpu.vector_store %arg2[%c3, %c0_9, %c0_10], %21 {strides = array<i32>} : memref<28x8x128xf32, #tpu.memory_space<vmem>>, vector<1x8x128xf32>,
    %22 = vector.extract_strided_slice %1 {offsets = [1, 0, 0], sizes = [1, 8, 128], strides = [1, 1, 1]} : vector<2x8x128xf32> to vector<1x8x128xf32>
    %23 = vector.shape_cast %22 : vector<1x8x128xf32> to vector<8x128xf32>
    %c4 = arith.constant 4 : index
    %c0_11 = arith.constant 0 : index
    %c0_12 = arith.constant 0 : index
    %24 = vector.load %arg2[%c4, %c0_11, %c0_12] : memref<28x8x128xf32, #tpu.memory_space<vmem>>, vector<1x8x128xf32>
    %25 = vector.shape_cast %24 : vector<1x8x128xf32> to vector<8x128xf32>
    %26 = vector.shape_cast %23 : vector<8x128xf32> to vector<1x8x128xf32>
    tpu.vector_store %arg2[%c4, %c0_11, %c0_12], %26 {strides = array<i32>} : memref<28x8x128xf32, #tpu.memory_space<vmem>>, vector<1x8x128xf32>,
    %27 = vector.extract_strided_slice %2 {offsets = [0, 0, 0], sizes = [1, 8, 128], strides = [1, 1, 1]} : vector<2x8x128xf32> to vector<1x8x128xf32>
    %28 = vector.shape_cast %27 : vector<1x8x128xf32> to vector<8x128xf32>
    %c5 = arith.constant 5 : index
    %c0_13 = arith.constant 0 : index
    %c0_14 = arith.constant 0 : index
    %29 = vector.load %arg2[%c5, %c0_13, %c0_14] : memref<28x8x128xf32, #tpu.memory_space<vmem>>, vector<1x8x128xf32>
    %30 = vector.shape_cast %29 : vector<1x8x128xf32> to vector<8x128xf32>
    %31 = vector.shape_cast %28 : vector<8x128xf32> to vector<1x8x128xf32>
    tpu.vector_store %arg2[%c5, %c0_13, %c0_14], %31 {strides = array<i32>} : memref<28x8x128xf32, #tpu.memory_space<vmem>>, vector<1x8x128xf32>,
    %32 = vector.extract_strided_slice %2 {offsets = [1, 0, 0], sizes = [1, 8, 128], strides = [1, 1, 1]} : vector<2x8x128xf32> to vector<1x8x128xf32>
    %33 = vector.shape_cast %32 : vector<1x8x128xf32> to vector<8x128xf32>
    %c6 = arith.constant 6 : index
    %c0_15 = arith.constant 0 : index
    %c0_16 = arith.constant 0 : index
    %34 = vector.load %arg2[%c6, %c0_15, %c0_16] : memref<28x8x128xf32, #tpu.memory_space<vmem>>, vector<1x8x128xf32>
    %35 = vector.shape_cast %34 : vector<1x8x128xf32> to vector<8x128xf32>
    %36 = vector.shape_cast %33 : vector<8x128xf32> to vector<1x8x128xf32>
    tpu.vector_store %arg2[%c6, %c0_15, %c0_16], %36 {strides = array<i32>} : memref<28x8x128xf32, #tpu.memory_space<vmem>>, vector<1x8x128xf32>,
    %c1_17 = arith.constant 1 : index
    %c0_18 = arith.constant 0 : index
    %c0_19 = arith.constant 0 : index
    %37 = vector.load %arg2[%c1_17, %c0_18, %c0_19] : memref<28x8x128xf32, #tpu.memory_space<vmem>>, vector<1x8x128xf32>
    %38 = vector.shape_cast %37 : vector<1x8x128xf32> to vector<8x128xf32>
    %39 = vector.extract_strided_slice %0 {offsets = [0, 0, 0], sizes = [1, 8, 128], strides = [1, 1, 1]} : vector<2x8x128xf32> to vector<1x8x128xf32>
    %40 = vector.shape_cast %39 : vector<1x8x128xf32> to vector<8x128xf32>
    %41 = arith.mulf %38, %40 : vector<8x128xf32>
    %c7 = arith.constant 7 : index
    %c0_20 = arith.constant 0 : index
    %c0_21 = arith.constant 0 : index
    %42 = vector.load %arg2[%c7, %c0_20, %c0_21] : memref<28x8x128xf32, #tpu.memory_space<vmem>>, vector<1x8x128xf32>
    %43 = vector.shape_cast %42 : vector<1x8x128xf32> to vector<8x128xf32>
    %44 = vector.shape_cast %41 : vector<8x128xf32> to vector<1x8x128xf32>
    tpu.vector_store %arg2[%c7, %c0_20, %c0_21], %44 {strides = array<i32>} : memref<28x8x128xf32, #tpu.memory_space<vmem>>, vector<1x8x128xf32>,
    %c1_22 = arith.constant 1 : index
    %c0_23 = arith.constant 0 : index
    %c0_24 = arith.constant 0 : index
    %45 = vector.load %arg2[%c1_22, %c0_23, %c0_24] : memref<28x8x128xf32, #tpu.memory_space<vmem>>, vector<1x8x128xf32>
    %46 = vector.shape_cast %45 : vector<1x8x128xf32> to vector<8x128xf32>
    %47 = vector.extract_strided_slice %0 {offsets = [1, 0, 0], sizes = [1, 8, 128], strides = [1, 1, 1]} : vector<2x8x128xf32> to vector<1x8x128xf32>
    %48 = vector.shape_cast %47 : vector<1x8x128xf32> to vector<8x128xf32>
    %49 = arith.mulf %46, %48 : vector<8x128xf32>
    %c8 = arith.constant 8 : index
    %c0_25 = arith.constant 0 : index
    %c0_26 = arith.constant 0 : index
    %50 = vector.load %arg2[%c8, %c0_25, %c0_26] : memref<28x8x128xf32, #tpu.memory_space<vmem>>, vector<1x8x128xf32>
    %51 = vector.shape_cast %50 : vector<1x8x128xf32> to vector<8x128xf32>
    %52 = vector.shape_cast %49 : vector<8x128xf32> to vector<1x8x128xf32>
    tpu.vector_store %arg2[%c8, %c0_25, %c0_26], %52 {strides = array<i32>} : memref<28x8x128xf32, #tpu.memory_space<vmem>>, vector<1x8x128xf32>,
    %c1_27 = arith.constant 1 : index
    %c0_28 = arith.constant 0 : index
    %c0_29 = arith.constant 0 : index
    %53 = vector.load %arg2[%c1_27, %c0_28, %c0_29] : memref<28x8x128xf32, #tpu.memory_space<vmem>>, vector<1x8x128xf32>
    %54 = vector.shape_cast %53 : vector<1x8x128xf32> to vector<8x128xf32>
    %55 = vector.extract_strided_slice %1 {offsets = [0, 0, 0], sizes = [1, 8, 128], strides = [1, 1, 1]} : vector<2x8x128xf32> to vector<1x8x128xf32>
    %56 = vector.shape_cast %55 : vector<1x8x128xf32> to vector<8x128xf32>
    %57 = arith.mulf %54, %56 : vector<8x128xf32>
    %c9 = arith.constant 9 : index
    %c0_30 = arith.constant 0 : index
    %c0_31 = arith.constant 0 : index
    %58 = vector.load %arg2[%c9, %c0_30, %c0_31] : memref<28x8x128xf32, #tpu.memory_space<vmem>>, vector<1x8x128xf32>
    %59 = vector.shape_cast %58 : vector<1x8x128xf32> to vector<8x128xf32>
    %60 = vector.shape_cast %57 : vector<8x128xf32> to vector<1x8x128xf32>
    tpu.vector_store %arg2[%c9, %c0_30, %c0_31], %60 {strides = array<i32>} : memref<28x8x128xf32, #tpu.memory_space<vmem>>, vector<1x8x128xf32>,
    %c1_32 = arith.constant 1 : index
    %c0_33 = arith.constant 0 : index
    %c0_34 = arith.constant 0 : index
    %61 = vector.load %arg2[%c1_32, %c0_33, %c0_34] : memref<28x8x128xf32, #tpu.memory_space<vmem>>, vector<1x8x128xf32>
    %62 = vector.shape_cast %61 : vector<1x8x128xf32> to vector<8x128xf32>
    %63 = vector.extract_strided_slice %1 {offsets = [1, 0, 0], sizes = [1, 8, 128], strides = [1, 1, 1]} : vector<2x8x128xf32> to vector<1x8x128xf32>
    %64 = vector.shape_cast %63 : vector<1x8x128xf32> to vector<8x128xf32>
    %65 = arith.mulf %62, %64 : vector<8x128xf32>
    %c10 = arith.constant 10 : index
    %c0_35 = arith.constant 0 : index
    %c0_36 = arith.constant 0 : index
    %66 = vector.load %arg2[%c10, %c0_35, %c0_36] : memref<28x8x128xf32, #tpu.memory_space<vmem>>, vector<1x8x128xf32>
    %67 = vector.shape_cast %66 : vector<1x8x128xf32> to vector<8x128xf32>
    %68 = vector.shape_cast %65 : vector<8x128xf32> to vector<1x8x128xf32>
    tpu.vector_store %arg2[%c10, %c0_35, %c0_36], %68 {strides = array<i32>} : memref<28x8x128xf32, #tpu.memory_space<vmem>>, vector<1x8x128xf32>,
    %c1_37 = arith.constant 1 : index
    %c0_38 = arith.constant 0 : index
    %c0_39 = arith.constant 0 : index
    %69 = vector.load %arg2[%c1_37, %c0_38, %c0_39] : memref<28x8x128xf32, #tpu.memory_space<vmem>>, vector<1x8x128xf32>
    %70 = vector.shape_cast %69 : vector<1x8x128xf32> to vector<8x128xf32>
    %71 = vector.extract_strided_slice %2 {offsets = [0, 0, 0], sizes = [1, 8, 128], strides = [1, 1, 1]} : vector<2x8x128xf32> to vector<1x8x128xf32>
    %72 = vector.shape_cast %71 : vector<1x8x128xf32> to vector<8x128xf32>
    %73 = arith.mulf %70, %72 : vector<8x128xf32>
    %c11 = arith.constant 11 : index
    %c0_40 = arith.constant 0 : index
    %c0_41 = arith.constant 0 : index
    %74 = vector.load %arg2[%c11, %c0_40, %c0_41] : memref<28x8x128xf32, #tpu.memory_space<vmem>>, vector<1x8x128xf32>
    %75 = vector.shape_cast %74 : vector<1x8x128xf32> to vector<8x128xf32>
    %76 = vector.shape_cast %73 : vector<8x128xf32> to vector<1x8x128xf32>
    tpu.vector_store %arg2[%c11, %c0_40, %c0_41], %76 {strides = array<i32>} : memref<28x8x128xf32, #tpu.memory_space<vmem>>, vector<1x8x128xf32>,
    %c1_42 = arith.constant 1 : index
    %c0_43 = arith.constant 0 : index
    %c0_44 = arith.constant 0 : index
    %77 = vector.load %arg2[%c1_42, %c0_43, %c0_44] : memref<28x8x128xf32, #tpu.memory_space<vmem>>, vector<1x8x128xf32>
    %78 = vector.shape_cast %77 : vector<1x8x128xf32> to vector<8x128xf32>
    %79 = vector.extract_strided_slice %2 {offsets = [1, 0, 0], sizes = [1, 8, 128], strides = [1, 1, 1]} : vector<2x8x128xf32> to vector<1x8x128xf32>
    %80 = vector.shape_cast %79 : vector<1x8x128xf32> to vector<8x128xf32>
    %81 = arith.mulf %78, %80 : vector<8x128xf32>
    %c12 = arith.constant 12 : index
    %c0_45 = arith.constant 0 : index
    %c0_46 = arith.constant 0 : index
    %82 = vector.load %arg2[%c12, %c0_45, %c0_46] : memref<28x8x128xf32, #tpu.memory_space<vmem>>, vector<1x8x128xf32>
    %83 = vector.shape_cast %82 : vector<1x8x128xf32> to vector<8x128xf32>
    %84 = vector.shape_cast %81 : vector<8x128xf32> to vector<1x8x128xf32>
    tpu.vector_store %arg2[%c12, %c0_45, %c0_46], %84 {strides = array<i32>} : memref<28x8x128xf32, #tpu.memory_space<vmem>>, vector<1x8x128xf32>,
    %c2_47 = arith.constant 2 : index
    %c0_48 = arith.constant 0 : index
    %c0_49 = arith.constant 0 : index
    %85 = vector.load %arg2[%c2_47, %c0_48, %c0_49] : memref<28x8x128xf32, #tpu.memory_space<vmem>>, vector<1x8x128xf32>
    %86 = vector.shape_cast %85 : vector<1x8x128xf32> to vector<8x128xf32>
    %87 = vector.extract_strided_slice %0 {offsets = [1, 0, 0], sizes = [1, 8, 128], strides = [1, 1, 1]} : vector<2x8x128xf32> to vector<1x8x128xf32>
    %88 = vector.shape_cast %87 : vector<1x8x128xf32> to vector<8x128xf32>
    %89 = arith.mulf %86, %88 : vector<8x128xf32>
    %c13 = arith.constant 13 : index
    %c0_50 = arith.constant 0 : index
    %c0_51 = arith.constant 0 : index
    %90 = vector.load %arg2[%c13, %c0_50, %c0_51] : memref<28x8x128xf32, #tpu.memory_space<vmem>>, vector<1x8x128xf32>
    %91 = vector.shape_cast %90 : vector<1x8x128xf32> to vector<8x128xf32>
    %92 = vector.shape_cast %89 : vector<8x128xf32> to vector<1x8x128xf32>
    tpu.vector_store %arg2[%c13, %c0_50, %c0_51], %92 {strides = array<i32>} : memref<28x8x128xf32, #tpu.memory_space<vmem>>, vector<1x8x128xf32>,
    %c2_52 = arith.constant 2 : index
    %c0_53 = arith.constant 0 : index
    %c0_54 = arith.constant 0 : index
    %93 = vector.load %arg2[%c2_52, %c0_53, %c0_54] : memref<28x8x128xf32, #tpu.memory_space<vmem>>, vector<1x8x128xf32>
    %94 = vector.shape_cast %93 : vector<1x8x128xf32> to vector<8x128xf32>
    %95 = vector.extract_strided_slice %1 {offsets = [0, 0, 0], sizes = [1, 8, 128], strides = [1, 1, 1]} : vector<2x8x128xf32> to vector<1x8x128xf32>
    %96 = vector.shape_cast %95 : vector<1x8x128xf32> to vector<8x128xf32>
    %97 = arith.mulf %94, %96 : vector<8x128xf32>
    %c14 = arith.constant 14 : index
    %c0_55 = arith.constant 0 : index
    %c0_56 = arith.constant 0 : index
    %98 = vector.load %arg2[%c14, %c0_55, %c0_56] : memref<28x8x128xf32, #tpu.memory_space<vmem>>, vector<1x8x128xf32>
    %99 = vector.shape_cast %98 : vector<1x8x128xf32> to vector<8x128xf32>
    %100 = vector.shape_cast %97 : vector<8x128xf32> to vector<1x8x128xf32>
    tpu.vector_store %arg2[%c14, %c0_55, %c0_56], %100 {strides = array<i32>} : memref<28x8x128xf32, #tpu.memory_space<vmem>>, vector<1x8x128xf32>,
    %c2_57 = arith.constant 2 : index
    %c0_58 = arith.constant 0 : index
    %c0_59 = arith.constant 0 : index
    %101 = vector.load %arg2[%c2_57, %c0_58, %c0_59] : memref<28x8x128xf32, #tpu.memory_space<vmem>>, vector<1x8x128xf32>
    %102 = vector.shape_cast %101 : vector<1x8x128xf32> to vector<8x128xf32>
    %103 = vector.extract_strided_slice %1 {offsets = [1, 0, 0], sizes = [1, 8, 128], strides = [1, 1, 1]} : vector<2x8x128xf32> to vector<1x8x128xf32>
    %104 = vector.shape_cast %103 : vector<1x8x128xf32> to vector<8x128xf32>
    %105 = arith.mulf %102, %104 : vector<8x128xf32>
    %c15 = arith.constant 15 : index
    %c0_60 = arith.constant 0 : index
    %c0_61 = arith.constant 0 : index
    %106 = vector.load %arg2[%c15, %c0_60, %c0_61] : memref<28x8x128xf32, #tpu.memory_space<vmem>>, vector<1x8x128xf32>
    %107 = vector.shape_cast %106 : vector<1x8x128xf32> to vector<8x128xf32>
    %108 = vector.shape_cast %105 : vector<8x128xf32> to vector<1x8x128xf32>
    tpu.vector_store %arg2[%c15, %c0_60, %c0_61], %108 {strides = array<i32>} : memref<28x8x128xf32, #tpu.memory_space<vmem>>, vector<1x8x128xf32>,
    %c2_62 = arith.constant 2 : index
    %c0_63 = arith.constant 0 : index
    %c0_64 = arith.constant 0 : index
    %109 = vector.load %arg2[%c2_62, %c0_63, %c0_64] : memref<28x8x128xf32, #tpu.memory_space<vmem>>, vector<1x8x128xf32>
    %110 = vector.shape_cast %109 : vector<1x8x128xf32> to vector<8x128xf32>
    %111 = vector.extract_strided_slice %2 {offsets = [0, 0, 0], sizes = [1, 8, 128], strides = [1, 1, 1]} : vector<2x8x128xf32> to vector<1x8x128xf32>
    %112 = vector.shape_cast %111 : vector<1x8x128xf32> to vector<8x128xf32>
    %113 = arith.mulf %110, %112 : vector<8x128xf32>
    %c16 = arith.constant 16 : index
    %c0_65 = arith.constant 0 : index
    %c0_66 = arith.constant 0 : index
    %114 = vector.load %arg2[%c16, %c0_65, %c0_66] : memref<28x8x128xf32, #tpu.memory_space<vmem>>, vector<1x8x128xf32>
    %115 = vector.shape_cast %114 : vector<1x8x128xf32> to vector<8x128xf32>
    %116 = vector.shape_cast %113 : vector<8x128xf32> to vector<1x8x128xf32>
    tpu.vector_store %arg2[%c16, %c0_65, %c0_66], %116 {strides = array<i32>} : memref<28x8x128xf32, #tpu.memory_space<vmem>>, vector<1x8x128xf32>,
    %c2_67 = arith.constant 2 : index
    %c0_68 = arith.constant 0 : index
    %c0_69 = arith.constant 0 : index
    %117 = vector.load %arg2[%c2_67, %c0_68, %c0_69] : memref<28x8x128xf32, #tpu.memory_space<vmem>>, vector<1x8x128xf32>
    %118 = vector.shape_cast %117 : vector<1x8x128xf32> to vector<8x128xf32>
    %119 = vector.extract_strided_slice %2 {offsets = [1, 0, 0], sizes = [1, 8, 128], strides = [1, 1, 1]} : vector<2x8x128xf32> to vector<1x8x128xf32>
    %120 = vector.shape_cast %119 : vector<1x8x128xf32> to vector<8x128xf32>
    %121 = arith.mulf %118, %120 : vector<8x128xf32>
    %c17 = arith.constant 17 : index
    %c0_70 = arith.constant 0 : index
    %c0_71 = arith.constant 0 : index
    %122 = vector.load %arg2[%c17, %c0_70, %c0_71] : memref<28x8x128xf32, #tpu.memory_space<vmem>>, vector<1x8x128xf32>
    %123 = vector.shape_cast %122 : vector<1x8x128xf32> to vector<8x128xf32>
    %124 = vector.shape_cast %121 : vector<8x128xf32> to vector<1x8x128xf32>
    tpu.vector_store %arg2[%c17, %c0_70, %c0_71], %124 {strides = array<i32>} : memref<28x8x128xf32, #tpu.memory_space<vmem>>, vector<1x8x128xf32>,
    %c3_72 = arith.constant 3 : index
    %c0_73 = arith.constant 0 : index
    %c0_74 = arith.constant 0 : index
    %125 = vector.load %arg2[%c3_72, %c0_73, %c0_74] : memref<28x8x128xf32, #tpu.memory_space<vmem>>, vector<1x8x128xf32>
    %126 = vector.shape_cast %125 : vector<1x8x128xf32> to vector<8x128xf32>
    %127 = vector.extract_strided_slice %1 {offsets = [0, 0, 0], sizes = [1, 8, 128], strides = [1, 1, 1]} : vector<2x8x128xf32> to vector<1x8x128xf32>
    %128 = vector.shape_cast %127 : vector<1x8x128xf32> to vector<8x128xf32>
    %129 = arith.mulf %126, %128 : vector<8x128xf32>
    %c18 = arith.constant 18 : index
    %c0_75 = arith.constant 0 : index
    %c0_76 = arith.constant 0 : index
    %130 = vector.load %arg2[%c18, %c0_75, %c0_76] : memref<28x8x128xf32, #tpu.memory_space<vmem>>, vector<1x8x128xf32>
    %131 = vector.shape_cast %130 : vector<1x8x128xf32> to vector<8x128xf32>
    %132 = vector.shape_cast %129 : vector<8x128xf32> to vector<1x8x128xf32>
    tpu.vector_store %arg2[%c18, %c0_75, %c0_76], %132 {strides = array<i32>} : memref<28x8x128xf32, #tpu.memory_space<vmem>>, vector<1x8x128xf32>,
    %c3_77 = arith.constant 3 : index
    %c0_78 = arith.constant 0 : index
    %c0_79 = arith.constant 0 : index
    %133 = vector.load %arg2[%c3_77, %c0_78, %c0_79] : memref<28x8x128xf32, #tpu.memory_space<vmem>>, vector<1x8x128xf32>
    %134 = vector.shape_cast %133 : vector<1x8x128xf32> to vector<8x128xf32>
    %135 = vector.extract_strided_slice %1 {offsets = [1, 0, 0], sizes = [1, 8, 128], strides = [1, 1, 1]} : vector<2x8x128xf32> to vector<1x8x128xf32>
    %136 = vector.shape_cast %135 : vector<1x8x128xf32> to vector<8x128xf32>
    %137 = arith.mulf %134, %136 : vector<8x128xf32>
    %c19 = arith.constant 19 : index
    %c0_80 = arith.constant 0 : index
    %c0_81 = arith.constant 0 : index
    %138 = vector.load %arg2[%c19, %c0_80, %c0_81] : memref<28x8x128xf32, #tpu.memory_space<vmem>>, vector<1x8x128xf32>
    %139 = vector.shape_cast %138 : vector<1x8x128xf32> to vector<8x128xf32>
    %140 = vector.shape_cast %137 : vector<8x128xf32> to vector<1x8x128xf32>
    tpu.vector_store %arg2[%c19, %c0_80, %c0_81], %140 {strides = array<i32>} : memref<28x8x128xf32, #tpu.memory_space<vmem>>, vector<1x8x128xf32>,
    %c3_82 = arith.constant 3 : index
    %c0_83 = arith.constant 0 : index
    %c0_84 = arith.constant 0 : index
    %141 = vector.load %arg2[%c3_82, %c0_83, %c0_84] : memref<28x8x128xf32, #tpu.memory_space<vmem>>, vector<1x8x128xf32>
    %142 = vector.shape_cast %141 : vector<1x8x128xf32> to vector<8x128xf32>
    %143 = vector.extract_strided_slice %2 {offsets = [0, 0, 0], sizes = [1, 8, 128], strides = [1, 1, 1]} : vector<2x8x128xf32> to vector<1x8x128xf32>
    %144 = vector.shape_cast %143 : vector<1x8x128xf32> to vector<8x128xf32>
    %145 = arith.mulf %142, %144 : vector<8x128xf32>
    %c20 = arith.constant 20 : index
    %c0_85 = arith.constant 0 : index
    %c0_86 = arith.constant 0 : index
    %146 = vector.load %arg2[%c20, %c0_85, %c0_86] : memref<28x8x128xf32, #tpu.memory_space<vmem>>, vector<1x8x128xf32>
    %147 = vector.shape_cast %146 : vector<1x8x128xf32> to vector<8x128xf32>
    %148 = vector.shape_cast %145 : vector<8x128xf32> to vector<1x8x128xf32>
    tpu.vector_store %arg2[%c20, %c0_85, %c0_86], %148 {strides = array<i32>} : memref<28x8x128xf32, #tpu.memory_space<vmem>>, vector<1x8x128xf32>,
    %c3_87 = arith.constant 3 : index
    %c0_88 = arith.constant 0 : index
    %c0_89 = arith.constant 0 : index
    %149 = vector.load %arg2[%c3_87, %c0_88, %c0_89] : memref<28x8x128xf32, #tpu.memory_space<vmem>>, vector<1x8x128xf32>
    %150 = vector.shape_cast %149 : vector<1x8x128xf32> to vector<8x128xf32>
    %151 = vector.extract_strided_slice %2 {offsets = [1, 0, 0], sizes = [1, 8, 128], strides = [1, 1, 1]} : vector<2x8x128xf32> to vector<1x8x128xf32>
    %152 = vector.shape_cast %151 : vector<1x8x128xf32> to vector<8x128xf32>
    %153 = arith.mulf %150, %152 : vector<8x128xf32>
    %c21 = arith.constant 21 : index
    %c0_90 = arith.constant 0 : index
    %c0_91 = arith.constant 0 : index
    %154 = vector.load %arg2[%c21, %c0_90, %c0_91] : memref<28x8x128xf32, #tpu.memory_space<vmem>>, vector<1x8x128xf32>
    %155 = vector.shape_cast %154 : vector<1x8x128xf32> to vector<8x128xf32>
    %156 = vector.shape_cast %153 : vector<8x128xf32> to vector<1x8x128xf32>
    tpu.vector_store %arg2[%c21, %c0_90, %c0_91], %156 {strides = array<i32>} : memref<28x8x128xf32, #tpu.memory_space<vmem>>, vector<1x8x128xf32>,
    %c4_92 = arith.constant 4 : index
    %c0_93 = arith.constant 0 : index
    %c0_94 = arith.constant 0 : index
    %157 = vector.load %arg2[%c4_92, %c0_93, %c0_94] : memref<28x8x128xf32, #tpu.memory_space<vmem>>, vector<1x8x128xf32>
    %158 = vector.shape_cast %157 : vector<1x8x128xf32> to vector<8x128xf32>
    %159 = vector.extract_strided_slice %1 {offsets = [1, 0, 0], sizes = [1, 8, 128], strides = [1, 1, 1]} : vector<2x8x128xf32> to vector<1x8x128xf32>
    %160 = vector.shape_cast %159 : vector<1x8x128xf32> to vector<8x128xf32>
    %161 = arith.mulf %158, %160 : vector<8x128xf32>
    %c22 = arith.constant 22 : index
    %c0_95 = arith.constant 0 : index
    %c0_96 = arith.constant 0 : index
    %162 = vector.load %arg2[%c22, %c0_95, %c0_96] : memref<28x8x128xf32, #tpu.memory_space<vmem>>, vector<1x8x128xf32>
    %163 = vector.shape_cast %162 : vector<1x8x128xf32> to vector<8x128xf32>
    %164 = vector.shape_cast %161 : vector<8x128xf32> to vector<1x8x128xf32>
    tpu.vector_store %arg2[%c22, %c0_95, %c0_96], %164 {strides = array<i32>} : memref<28x8x128xf32, #tpu.memory_space<vmem>>, vector<1x8x128xf32>,
    %c4_97 = arith.constant 4 : index
    %c0_98 = arith.constant 0 : index
    %c0_99 = arith.constant 0 : index
    %165 = vector.load %arg2[%c4_97, %c0_98, %c0_99] : memref<28x8x128xf32, #tpu.memory_space<vmem>>, vector<1x8x128xf32>
    %166 = vector.shape_cast %165 : vector<1x8x128xf32> to vector<8x128xf32>
    %167 = vector.extract_strided_slice %2 {offsets = [0, 0, 0], sizes = [1, 8, 128], strides = [1, 1, 1]} : vector<2x8x128xf32> to vector<1x8x128xf32>
    %168 = vector.shape_cast %167 : vector<1x8x128xf32> to vector<8x128xf32>
    %169 = arith.mulf %166, %168 : vector<8x128xf32>
    %c23 = arith.constant 23 : index
    %c0_100 = arith.constant 0 : index
    %c0_101 = arith.constant 0 : index
    %170 = vector.load %arg2[%c23, %c0_100, %c0_101] : memref<28x8x128xf32, #tpu.memory_space<vmem>>, vector<1x8x128xf32>
    %171 = vector.shape_cast %170 : vector<1x8x128xf32> to vector<8x128xf32>
    %172 = vector.shape_cast %169 : vector<8x128xf32> to vector<1x8x128xf32>
    tpu.vector_store %arg2[%c23, %c0_100, %c0_101], %172 {strides = array<i32>} : memref<28x8x128xf32, #tpu.memory_space<vmem>>, vector<1x8x128xf32>,
    %c4_102 = arith.constant 4 : index
    %c0_103 = arith.constant 0 : index
    %c0_104 = arith.constant 0 : index
    %173 = vector.load %arg2[%c4_102, %c0_103, %c0_104] : memref<28x8x128xf32, #tpu.memory_space<vmem>>, vector<1x8x128xf32>
    %174 = vector.shape_cast %173 : vector<1x8x128xf32> to vector<8x128xf32>
    %175 = vector.extract_strided_slice %2 {offsets = [1, 0, 0], sizes = [1, 8, 128], strides = [1, 1, 1]} : vector<2x8x128xf32> to vector<1x8x128xf32>
    %176 = vector.shape_cast %175 : vector<1x8x128xf32> to vector<8x128xf32>
    %177 = arith.mulf %174, %176 : vector<8x128xf32>
    %c24 = arith.constant 24 : index
    %c0_105 = arith.constant 0 : index
    %c0_106 = arith.constant 0 : index
    %178 = vector.load %arg2[%c24, %c0_105, %c0_106] : memref<28x8x128xf32, #tpu.memory_space<vmem>>, vector<1x8x128xf32>
    %179 = vector.shape_cast %178 : vector<1x8x128xf32> to vector<8x128xf32>
    %180 = vector.shape_cast %177 : vector<8x128xf32> to vector<1x8x128xf32>
    tpu.vector_store %arg2[%c24, %c0_105, %c0_106], %180 {strides = array<i32>} : memref<28x8x128xf32, #tpu.memory_space<vmem>>, vector<1x8x128xf32>,
    %c5_107 = arith.constant 5 : index
    %c0_108 = arith.constant 0 : index
    %c0_109 = arith.constant 0 : index
    %181 = vector.load %arg2[%c5_107, %c0_108, %c0_109] : memref<28x8x128xf32, #tpu.memory_space<vmem>>, vector<1x8x128xf32>
    %182 = vector.shape_cast %181 : vector<1x8x128xf32> to vector<8x128xf32>
    %183 = vector.extract_strided_slice %2 {offsets = [0, 0, 0], sizes = [1, 8, 128], strides = [1, 1, 1]} : vector<2x8x128xf32> to vector<1x8x128xf32>
    %184 = vector.shape_cast %183 : vector<1x8x128xf32> to vector<8x128xf32>
    %185 = arith.mulf %182, %184 : vector<8x128xf32>
    %c25 = arith.constant 25 : index
    %c0_110 = arith.constant 0 : index
    %c0_111 = arith.constant 0 : index
    %186 = vector.load %arg2[%c25, %c0_110, %c0_111] : memref<28x8x128xf32, #tpu.memory_space<vmem>>, vector<1x8x128xf32>
    %187 = vector.shape_cast %186 : vector<1x8x128xf32> to vector<8x128xf32>
    %188 = vector.shape_cast %185 : vector<8x128xf32> to vector<1x8x128xf32>
    tpu.vector_store %arg2[%c25, %c0_110, %c0_111], %188 {strides = array<i32>} : memref<28x8x128xf32, #tpu.memory_space<vmem>>, vector<1x8x128xf32>,
    %c5_112 = arith.constant 5 : index
    %c0_113 = arith.constant 0 : index
    %c0_114 = arith.constant 0 : index
    %189 = vector.load %arg2[%c5_112, %c0_113, %c0_114] : memref<28x8x128xf32, #tpu.memory_space<vmem>>, vector<1x8x128xf32>
    %190 = vector.shape_cast %189 : vector<1x8x128xf32> to vector<8x128xf32>
    %191 = vector.extract_strided_slice %2 {offsets = [1, 0, 0], sizes = [1, 8, 128], strides = [1, 1, 1]} : vector<2x8x128xf32> to vector<1x8x128xf32>
    %192 = vector.shape_cast %191 : vector<1x8x128xf32> to vector<8x128xf32>
    %193 = arith.mulf %190, %192 : vector<8x128xf32>
    %c26 = arith.constant 26 : index
    %c0_115 = arith.constant 0 : index
    %c0_116 = arith.constant 0 : index
    %194 = vector.load %arg2[%c26, %c0_115, %c0_116] : memref<28x8x128xf32, #tpu.memory_space<vmem>>, vector<1x8x128xf32>
    %195 = vector.shape_cast %194 : vector<1x8x128xf32> to vector<8x128xf32>
    %196 = vector.shape_cast %193 : vector<8x128xf32> to vector<1x8x128xf32>
    tpu.vector_store %arg2[%c26, %c0_115, %c0_116], %196 {strides = array<i32>} : memref<28x8x128xf32, #tpu.memory_space<vmem>>, vector<1x8x128xf32>,
    %c6_117 = arith.constant 6 : index
    %c0_118 = arith.constant 0 : index
    %c0_119 = arith.constant 0 : index
    %197 = vector.load %arg2[%c6_117, %c0_118, %c0_119] : memref<28x8x128xf32, #tpu.memory_space<vmem>>, vector<1x8x128xf32>
    %198 = vector.shape_cast %197 : vector<1x8x128xf32> to vector<8x128xf32>
    %199 = vector.extract_strided_slice %2 {offsets = [1, 0, 0], sizes = [1, 8, 128], strides = [1, 1, 1]} : vector<2x8x128xf32> to vector<1x8x128xf32>
    %200 = vector.shape_cast %199 : vector<1x8x128xf32> to vector<8x128xf32>
    %201 = arith.mulf %198, %200 : vector<8x128xf32>
    %c27 = arith.constant 27 : index
    %c0_120 = arith.constant 0 : index
    %c0_121 = arith.constant 0 : index
    %202 = vector.load %arg2[%c27, %c0_120, %c0_121] : memref<28x8x128xf32, #tpu.memory_space<vmem>>, vector<1x8x128xf32>
    %203 = vector.shape_cast %202 : vector<1x8x128xf32> to vector<8x128xf32>
    %204 = vector.shape_cast %201 : vector<8x128xf32> to vector<1x8x128xf32>
    tpu.vector_store %arg2[%c27, %c0_120, %c0_121], %204 {strides = array<i32>} : memref<28x8x128xf32, #tpu.memory_space<vmem>>, vector<1x8x128xf32>,
    return
  }
  func.func @transform_0(%arg0: i32) -> (i32, i32, i32) {
    %c0_i32 = arith.constant 0 : i32
    %c0_i32_0 = arith.constant 0 : i32
    %c0_i32_1 = arith.constant 0 : i32
    return %c0_i32, %arg0, %c0_i32_0 : i32, i32, i32
  }
  func.func @transform_1(%arg0: i32) -> (i32, i32, i32) {
    %c0_i32 = arith.constant 0 : i32
    %c0_i32_0 = arith.constant 0 : i32
    %c0_i32_1 = arith.constant 0 : i32
    return %c0_i32, %arg0, %c0_i32_0 : i32, i32, i32
  }
}

</mosaic_0001>

<bundles_post_ra>
// kernel: tpu_custom_call.1
= control target key start
LH: loop header
LB: loop body
LE: loop exit
PB: predicated region body
PF: predicated region fallthrough
CT: control target
= control target key end

     0   :  { %6 = vsyncpa [#allocation3], 0  ;;  %s1066_s0 = inlined_call_operand.hbm [shape: f32[2,8,128], index: 0, kind: input, shape index: {}]   ;;  %s1067_s1 = inlined_call_operand.hbm [shape: f32[28,8,128], index: 1, kind: output, shape index: {}]  }
   0x1   :  { %7 = vsyncpa [#allocation4], 0  ;;  %s12_s8 = sshll.u32 %s1066_s0, 4  ;;  %s837_s9 = smov [#allocation2]   ;;  %s13_s8 = int_to_ptr.hbm [resolvable:$true] %s12_s8 }
   0x2   :  { %s14_s10 = sshll.u32 %s837_s9, 4  ;;  %s838_s11 = smov 128   ;;  %s15_s10 = int_to_ptr.vmem [resolvable:$true] %s14_s10 }
   0x3   :  { %s839_s12 = smov 8  }
   0x4   :  { %20 = dma.hbm_to_vmem [thread:$0]  %s13_s8, 256, %s15_s10, [#allocation3], %s838_s11, %s838_s11, %s839_s12  }
   0x5   :  { %833 = dma.done.wait [#allocation3], 256  }
   0x6   :  { %834 = vsyncadd [#allocation3], 4294967040  ;;  %v865_v0 = vld [vmem:[#allocation2] sm:$0xff]  ;;  %v867_v1 = vld [vmem:[#allocation2 + $0x8] sm:$0xff]  ;;  %v840_v23 = vmov 683565275  }
   0x7   :  { %v30_v2 = vand.u32 2139095040, %v865_v0  ;;  %647 = vst [vmem:[#allocation5 + $0x8] sm:$0xff] %v865_v0  ;;  %v185_v3 = vand.u32 2139095040, %v867_v1  ;;  %v27_v4 = vand.u32 2147483647, %v865_v0  ;;  %s848_s0 = smov [#allocation5]  }
   0x8   :  { %649 = vst [vmem:[#allocation5 + $0x10] sm:$0xff] %v867_v1  ;;  %v182_v5 = vand.u32 2147483647, %v867_v1  ;;  %v841_v25 = vmov 2475754826   ;;  %s746_s13 = sshll.u32 %s848_s0, 4  ;;  %s747_s13 = int_to_ptr.vmem [resolvable:$true] %s746_s13 }
   0x9   :  { %v31_v6 = vshrl.u32 %v30_v2, 23  ;;  %v186_v7 = vshrl.u32 %v185_v3, 23  ;;  %v34_v8 = vand.u32 8388607, %v27_v4  ;;  %v842_v28 = vmov 2131351028  }
   0xa   :  { %v189_v11 = vand.u32 8388607, %v182_v5  ;;  %v843_v30 = vmov 2102212464   ;;  %v844_v32 = vmov 920167782  }
   0xb   :  { %v761_v9 = vadd.s32 4294967169, %v31_v6  ;;  %v764_v10 = vadd.s32 4294967169, %v186_v7  ;;  %v35_v12 = vor.u32 8388608, %v34_v8  ;;  %v845_v41 = vmov 1326507024   ;;  %s748_s16 = sshll.u32 %s1067_s1, 4  ;;  %s749_s16 = int_to_ptr.hbm [resolvable:$true] %s748_s16 }
   0xc   :  { %v190_v15 = vor.u32 8388608, %v189_v11 }
   0xd   :  { %v37_v13 = vadd.s32 1, %v761_v9  ;;  %v192_v14 = vadd.s32 1, %v764_v10  ;;  %v879_v18 = vshll.u32 %v35_v12, 8 }
   0xe   :  { %v886_v27 = vshll.u32 %v190_v15, 8 }
   0xf   :  { %vm38_vm0 = vcmp.gt.s32.totalorder %v37_v13, 0  ;;  %vm193_vm1 = vcmp.gt.s32.totalorder %v192_v14, 0  ;;  %v76_v34 = vand.u32 65535, %v879_v18  ;;  %v77_v38 = vshrl.u32 %v879_v18, 16 }
  0x10   :  { %v39_v16 = vsel %vm38_vm0, %v37_v13, 0  ;;  %v194_v17 = vsel %vm193_vm1, %v192_v14, 0 }
  0x11   :  { %v41_v19 = vand.u32 31, %v39_v16  ;;  %v881_v20 = vshrl.u32 %v39_v16, 5  ;;  %v883_v21 = vand.u32 31, %v194_v17  ;;  %v906_v52 = vshrl.u32 %v194_v17, 5 }
  0x13   :  { %v42_v22 = vsub.s32 32, %v41_v19  ;;  %v44_v24 = vshll.u32 %v840_v23, %v41_v19  ;;  %v47_v26 = vshll.u32 %v841_v25, %v41_v19  ;;  %v50_v29 = vshll.u32 %v842_v28, %v41_v19 }
  0x14   :  { %v53_v31 = vshll.u32 %v843_v30, %v41_v19  ;;  %v56_v33 = vshll.u32 %v844_v32, %v41_v19  ;;  %v894_v39 = vsub.s32 32, %v883_v21  ;;  %vm59_vm2 = vcmp.lt.s32.totalorder %v881_v20, 1 }
  0x15   :  { %v45_v35 = vshrl.u32 %v841_v25, %v42_v22  ;;  %v48_v36 = vshrl.u32 %v842_v28, %v42_v22  ;;  %v51_v37 = vshrl.u32 %v843_v30, %v42_v22  ;;  %v54_v40 = vshrl.u32 %v844_v32, %v42_v22 }
  0x16   :  { %v57_v42 = vshrl.u32 %v845_v41, %v42_v22  ;;  %vm62_vm3 = vcmp.lt.s32.totalorder %v881_v20, 4  ;;  %v43_v46 = vshrl.u32 %v840_v23, %v42_v22  ;;  %vm61_vm4 = vcmp.lt.s32.totalorder %v881_v20, 3 }
  0x17   :  { %v46_v43 = vor.u32 %v45_v35, %v44_v24  ;;  %v49_v44 = vor.u32 %v48_v36, %v47_v26  ;;  %v52_v45 = vor.u32 %v51_v37, %v50_v29  ;;  %v55_v47 = vor.u32 %v54_v40, %v53_v31 }
  0x18   :  { %v58_v48 = vor.u32 %v57_v42, %v56_v33  ;;  %vm60_vm5 = vcmp.lt.s32.totalorder %v881_v20, 2  ;;  %v199_v55 = vshll.u32 %v840_v23, %v883_v21  ;;  %v911_v58 = vshrl.u32 %v845_v41, %v894_v39 }
  0x19   :  { %v64_v49 = vsel %vm62_vm3, %v52_v45, 2102212464  ;;  %v67_v50 = vsel %vm59_vm2, %v46_v43, %v49_v44  ;;  %v71_v51 = vsel %vm59_vm2, %v49_v44, %v52_v45  ;;  %v68_v53 = vsel %vm62_vm3, %v55_v47, 920167782 }
  0x1a   :  { %v72_v54 = vsel %vm62_vm3, %v58_v48, 1326507024  ;;  %v69_v56 = vsel %vm61_vm4, %v52_v45, %v68_v53  ;;  %v200_v59 = vshrl.u32 %v841_v25, %v894_v39  ;;  %v63_v60 = vsel %vm59_vm2, %v43_v46, %v46_v43 }
  0x1b   :  { %v73_v57 = vsel %vm61_vm4, %v55_v47, %v72_v54  ;;  %v65_v61 = vsel %vm61_vm4, %v49_v44, %v64_v49  ;;  %v70_v62 = vsel %vm60_vm5, %v67_v50, %v69_v56  ;;  %v202_v9 = vshll.u32 %v841_v25, %v883_v21 }
  0x1c   :  { %v74_v63 = vsel %vm60_vm5, %v71_v51, %v73_v57  ;;  %v100_v6 = vand.u32 65535, %v70_v62  ;;  %v101_v7 = vshrl.u32 %v70_v62, 16  ;;  %v920_v8 = vor.u32 %v200_v59, %v199_v55 }
  0x1d   :  { %v78_v2 = vand.u32 65535, %v74_v63  ;;  %v79_v3 = vshrl.u32 %v74_v63, 16  ;;  %v203_v10 = vshrl.u32 %v842_v28, %v894_v39  ;;  %v205_v11 = vshll.u32 %v842_v28, %v883_v21 }
  0x1e   :  { %v206_v15 = vshrl.u32 %v843_v30, %v894_v39  ;;  %v102_v17 = vmul.u32 %v100_v6, %v76_v34  ;;  %v103_v19 = vmul.u32 %v101_v7, %v76_v34  ;;  %v104_v22 = vmul.u32 %v100_v6, %v77_v38 }
  0x1f   :  { %v80_v12 = vmul.u32 %v78_v2, %v76_v34  ;;  %v81_v13 = vmul.u32 %v79_v3, %v76_v34  ;;  %v82_v14 = vmul.u32 %v78_v2, %v77_v38  ;;  %v83_v16 = vmul.u32 %v79_v3, %v77_v38 }
  0x20   :  { %v105_v31 = vmul.u32 %v101_v7, %v77_v38  ;;  %v106_v25 = vshll.u32 %v103_v19, 16  ;;  %v107_v35 = vshrl.u32 %v103_v19, 16  ;;  %v108_v36 = vshll.u32 %v104_v22, 16 }
  0x21   :  { %v84_v24 = vshll.u32 %v81_v13, 16  ;;  %v85_v26 = vshrl.u32 %v81_v13, 16  ;;  %v86_v29 = vshll.u32 %v82_v14, 16  ;;  %v87_v33 = vshrl.u32 %v82_v14, 16 }
  0x22   :  { %v109_v37 = vshrl.u32 %v104_v22, 16  ;;  %v927_v40 = vor.u32 %v203_v10, %v202_v9  ;;  %v846_v41 = vmov 0   ;;  %vm110_vm7 = vc.u32 %v102_v17, %v106_v25 }
  0x23   :  { %vm88_vm6 = vc.u32 %v80_v12, %v84_v24  ;;  %v90_v28 = vadd.s32 %v84_v24, %v80_v12  ;;  %v112_v43 = vadd.s32 %v106_v25, %v102_v17  ;;  %v208_v34 = vshll.u32 %v843_v30, %v883_v21 }
  0x24   :  { %v89_v42 = vsel %vm88_vm6, 1, %v846_v41  ;;  %v111_v38 = vsel %vm110_vm7, 1, %v846_v41  ;;  %v209_v45 = vshrl.u32 %v844_v32, %v894_v39  ;;  %v207_v48 = vor.u32 %v206_v15, %v205_v11 }
  0x25   :  { %v91_v44 = vadd.s32 %v89_v42, %v83_v16  ;;  %vm92_vm8 = vc.u32 %v90_v28, %v86_v29  ;;  %v113_v47 = vadd.s32 %v111_v38, %v105_v31  ;;  %vm114_vm9 = vc.u32 %v112_v43, %v108_v36 }
  0x26   :  { %v93_v46 = vsel %vm92_vm8, 1, %v846_v41  ;;  %v115_v50 = vsel %vm114_vm9, 1, %v846_v41  ;;  %v210_v51 = vor.u32 %v209_v45, %v208_v34  ;;  %v211_v53 = vshll.u32 %v844_v32, %v883_v21 }
  0x27   :  { %v95_v49 = vadd.s32 %v93_v46, %v91_v44  ;;  %v939_v30 = vadd.s32 %v112_v43, %v108_v36  ;;  %v117_v54 = vadd.s32 %v115_v50, %v113_v47  ;;  %vm214_vm10 = vcmp.lt.s32.totalorder %v906_v52, 1 }
  0x28   :  { %vm216_vm11 = vcmp.lt.s32.totalorder %v906_v52, 3  ;;  %v213_v56 = vor.u32 %v911_v58, %v211_v53  ;;  %vm215_vm12 = vcmp.lt.s32.totalorder %v906_v52, 2  ;;  %vm217_vm13 = vcmp.lt.s32.totalorder %v906_v52, 4 }
  0x29   :  { %v96_v55 = vadd.s32 %v95_v49, %v85_v26  ;;  %v66_v57 = vsel %vm60_vm5, %v63_v60, %v65_v61  ;;  %v118_v59 = vadd.s32 %v117_v54, %v107_v35  ;;  %v222_v21 = vsel %vm214_vm10, %v920_v8, %v927_v40 }
  0x2a   :  { %v223_v32 = vsel %vm217_vm13, %v210_v51, 920167782  ;;  %v226_v63 = vsel %vm214_vm10, %v927_v40, %v207_v48  ;;  %v231_v20 = vand.u32 65535, %v886_v27  ;;  %v227_v2 = vsel %vm217_vm13, %v213_v56, 1326507024 }
  0x2b   :  { %v954_v62 = vadd.s32 %v96_v55, %v87_v33  ;;  %v224_v58 = vsel %vm216_vm11, %v207_v48, %v223_v32  ;;  %v119_v60 = vadd.s32 %v118_v59, %v109_v37  ;;  %v232_v3 = vshrl.u32 %v886_v27, 16 }
  0x2c   :  { %v225_v61 = vsel %vm215_vm12, %v222_v21, %v224_v58  ;;  %v120_v6 = vmul.u32 %v879_v18, %v66_v57  ;;  %v228_v7 = vsel %vm216_vm11, %v210_v51, %v227_v2  ;;  %v198_v16 = vshrl.u32 %v840_v23, %v894_v39 }
  0x2d   :  { %vm122_vm14 = vc.u32 %v954_v62, %v939_v30  ;;  %v255_v9 = vand.u32 65535, %v225_v61  ;;  %v123_v10 = vadd.s32 1, %v119_v60  ;;  %v229_v11 = vsel %vm215_vm12, %v226_v63, %v228_v7 }
  0x2e   :  { %v256_v12 = vshrl.u32 %v225_v61, 16  ;;  %v233_v13 = vand.u32 65535, %v229_v11  ;;  %v234_v14 = vshrl.u32 %v229_v11, 16  ;;  %v219_v25 = vsel %vm217_vm13, %v207_v48, 2102212464 }
  0x2f   :  { %v124_v15 = vsel %vm122_vm14, %v123_v10, %v119_v60  ;;  %v259_v18 = vmul.u32 %v255_v9, %v232_v3  ;;  %v257_v26 = vmul.u32 %v255_v9, %v231_v20  ;;  %v218_v28 = vsel %vm214_vm10, %v198_v16, %v920_v8 }
  0x30   :  { %v258_v17 = vmul.u32 %v256_v12, %v231_v20  ;;  %v125_v19 = vadd.s32 %v124_v15, %v120_v6  ;;  %v235_v22 = vmul.u32 %v233_v13, %v231_v20  ;;  %v236_v24 = vmul.u32 %v234_v14, %v231_v20 }
  0x31   :  { %v237_v29 = vmul.u32 %v233_v13, %v232_v3  ;;  %v238_v35 = vmul.u32 %v234_v14, %v232_v3  ;;  %v260_v23 = vmul.u32 %v256_v12, %v232_v3  ;;  %v263_v39 = vshll.u32 %v259_v18, 16 }
  0x32   :  { %v261_v31 = vshll.u32 %v258_v17, 16  ;;  %v126_v33 = vadd.s32 536870912, %v125_v19  ;;  %v239_v36 = vshll.u32 %v236_v24, 16  ;;  %v220_v34 = vsel %vm216_vm11, %v927_v40, %v219_v25 }
  0x33   :  { %v241_v37 = vshll.u32 %v237_v29, 16  ;;  %v240_v8 = vshrl.u32 %v236_v24, 16  ;;  %v262_v49 = vshrl.u32 %v258_v17, 16  ;;  %v242_v53 = vshrl.u32 %v237_v29, 16 }
  0x34   :  { %v981_v42 = vshrl.u32 %v126_v33, 30  ;;  %vm243_vm15 = vc.u32 %v235_v22, %v239_v36  ;;  %v245_v43 = vadd.s32 %v239_v36, %v235_v22  ;;  %vm265_vm0 = vc.u32 %v257_v26, %v261_v31 }
  0x35   :  { %v244_v44 = vsel %vm243_vm15, 1, %v846_v41  ;;  %v266_v38 = vsel %vm265_vm0, 1, %v846_v41  ;;  %v267_v45 = vadd.s32 %v261_v31, %v257_v26  ;;  %v264_v55 = vshrl.u32 %v259_v18, 16 }
  0x36   :  { %v128_v46 = vshll.u32 %v981_v42, 30  ;;  %v246_v47 = vadd.s32 %v244_v44, %v238_v35  ;;  %vm247_vm1 = vc.u32 %v245_v43, %v241_v37  ;;  %v268_v50 = vadd.s32 %v266_v38, %v260_v23 }
  0x37   :  { %v248_v48 = vsel %vm247_vm1, 1, %v846_v41  ;;  %vm269_vm2 = vc.u32 %v267_v45, %v263_v39  ;;  %v271_v21 = vadd.s32 %v267_v45, %v263_v39  ;;  %v221_v32 = vsel %vm215_vm12, %v218_v28, %v220_v34 }
  0x38   :  { %v129_v51 = vsub.s32 %v125_v19, %v128_v46  ;;  %v250_v54 = vadd.s32 %v248_v48, %v246_v47  ;;  %v270_v40 = vsel %vm269_vm2, 1, %v846_v41  ;;  %v275_v2 = vmul.u32 %v886_v27, %v221_v32 }
  0x39   :  { %v272_v56 = vadd.s32 %v270_v40, %v268_v50  ;;  %v121_v41 = vadd.s32 %v939_v30, %v954_v62  ;;  %v151_v26 = vsub.s32 4, %v981_v42  ;;  %vm29_vm6 = vcmp.lt.s32.totalorder %v865_v0, 0 }
  0x3a   :  { %vm130_vm3 = vcmp.lt.s32.totalorder %v129_v51, 0  ;;  %v131_v57 = vsub.s32 0, %v129_v51  ;;  %v251_v59 = vadd.s32 %v250_v54, %v240_v8  ;;  %vm28_vm8 = vcmp.le.f32.partialorder %v27_v4, 0.7853982 }
  0x3b   :  { %v273_v58 = vadd.s32 %v272_v56, %v262_v49  ;;  %v152_v35 = vsel %vm29_vm6, %v151_v26, %v981_v42  ;;  %vm184_vm13 = vcmp.lt.s32.totalorder %v867_v1, 0  ;;  %vm170_vm1 = vweird.f32 %v865_v0 }
  0x3c   :  { %v132_v63 = vsel %vm130_vm3, %v131_v57, %v129_v51  ;;  %v252_v20 = vadd.s32 %v251_v59, %v242_v53  ;;  %v154_v39 = vsel %vm28_vm8, 0, %v152_v35  ;;  %vm1016_vm2 = vcmp.le.f32.partialorder %v182_v5, 0.7853982 }
  0x3d   :  { %v133_v60 = vclz %v132_v63  ;;  %v274_v61 = vadd.s32 %v273_v58, %v264_v55  ;;  %v171_v47 = vadd.s32 3, %v154_v39  ;;  %v481_v56 = vand.u32 3, %v154_v39 }
  0x3e   :  { %vm277_vm4 = vc.u32 %v252_v20, %v271_v21  ;;  %v276_v44 = vadd.s32 %v271_v21, %v252_v20  ;;  %v659_v58 = vmul.f32 %v865_v0, %v865_v0  ;;  %v663_v20 = vmul.f32 %v867_v1, %v865_v0 }
  0x3f   :  { %v762_v3 = vadd.s32 4294967294, %v133_v60  ;;  %v278_v6 = vadd.s32 1, %v274_v61  ;;  %v172_v55 = vand.u32 3, %v171_v47  ;;  %v683_v60 = vmul.f32 %v867_v1, %v867_v1 }
  0x40   :  { %vm486_vm11 = vcmp.eq.s32.totalorder %v481_v56, 2  ;;  %661 = vst [vmem:[#allocation5 + $0x38] sm:$0xff] %v659_v58  ;;  %vm482_vm15 = vcmp.lt.s32.totalorder %v481_v56, 2  ;;  %vm483_vm0 = vcmp.eq.s32.totalorder %v481_v56, 0 }
  0x41   :  { %vm763_vm5 = vcmp.lt.s32.totalorder %v762_v3, 0  ;;  %v279_v7 = vsel %vm277_vm4, %v278_v6, %v274_v61  ;;  %vm177_vm10 = vcmp.eq.s32.totalorder %v172_v55, 2  ;;  %vm173_vm12 = vcmp.lt.s32.totalorder %v172_v55, 2  ;;  %665 = vst [vmem:[#allocation5 + $0x40] sm:$0xff] %v663_v20 }
  0x42   :  { %v136_v9 = vsel %vm763_vm5, 0, %v762_v3  ;;  %v280_v10 = vadd.s32 %v279_v7, %v275_v2  ;;  %v847_v3 = vmov 1.0   ;;  %vm174_vm14 = vcmp.eq.s32.totalorder %v172_v55, 0  ;;  %685 = vst [vmem:[#allocation5 + $0x68] sm:$0xff] %v683_v60 }
  0x43   :  { %v137_v11 = vsub.s32 32, %v136_v9  ;;  %v138_v52 = vshll.u32 %v129_v51, %v136_v9  ;;  %v141_v12 = vsub.s32 4294967266, %v136_v9  ;;  %645 = vst [vmem:[#allocation5] sm:$0xff] %v847_v3 }
  0x44   :  { %v281_v15 = vadd.s32 536870912, %v280_v10 }
  0x45   :  { %v139_v13 = vshrl.u32 %v121_v41, %v137_v11  ;;  %v142_v14 = vadd.s32 127, %v141_v12 }
  0x46   :  { %v996_v18 = vshrl.u32 %v281_v15, 30 }
  0x47   :  { %v140_v16 = vor.u32 %v139_v13, %v138_v52  ;;  %v143_v17 = vshll.u32 %v142_v14, 23 }
  0x48   :  { %v283_v22 = vshll.u32 %v996_v18, 30  ;;  %v306_v12 = vsub.s32 4, %v996_v18 }
  0x49   :  { %v144_v27 = vor.u32 4788187, %v143_v17  ;;  %v147_v19 = vcvt.s32.f32 %v140_v16 }
  0x4a   :  { %v284_v30 = vsub.s32 %v280_v10, %v283_v22  ;;  %v307_v5 = vsel %vm184_vm13, %v306_v12, %v996_v18 }
  0x4b   :  { %v145_v24 = vand.u32 2147483647, %v144_v27 }
  0x4c   :  { %vm285_vm7 = vcmp.lt.s32.totalorder %v284_v30, 0  ;;  %v286_v29 = vsub.s32 0, %v284_v30 }
  0x4d   :  { %v148_v62 = vmul.f32 %v147_v19, %v145_v24 }
  0x4e   :  { %v287_v33 = vsel %vm285_vm7, %v286_v29, %v284_v30 }
  0x4f   :  { %v149_v31 = vxor.u32 2147483648, %v148_v62  ;;  %v288_v36 = vclz %v287_v33  ;;  %v309_v33 = vsel %vm1016_vm2, 0, %v307_v5 }
  0x51   :  { %v150_v25 = vsel %vm29_vm6, %v149_v31, %v148_v62  ;;  %v765_v23 = vadd.s32 4294967294, %v288_v36 }
  0x52   :  { %v153_v28 = vsel %vm28_vm8, %v865_v0, %v150_v25 }
  0x53   :  { %v155_v37 = vmul.f32 %v153_v28, %v153_v28  ;;  %vm766_vm9 = vcmp.lt.s32.totalorder %v765_v23, 0 }
  0x54   :  { %v291_v38 = vsel %vm766_vm9, 0, %v765_v23  ;;  %vm325_vm9 = vweird.f32 %v867_v1 }
  0x55   :  { %v156_v43 = vmul.f32 -0.001358992, %v155_v37  ;;  %v163_v34 = vmul.f32 -0.00019511016, %v155_v37  ;;  %v292_v8 = vsub.s32 32, %v291_v38  ;;  %v293_v4 = vshll.u32 %v284_v30, %v291_v38 }
  0x56   :  { %v296_v48 = vsub.s32 4294967266, %v291_v38 }
  0x57   :  { %v157_v45 = vadd.f32 0.041655596, %v156_v43  ;;  %v164_v46 = vadd.f32 0.008332121, %v163_v34  ;;  %v294_v42 = vshrl.u32 %v276_v44, %v292_v8  ;;  %v326_v43 = vadd.s32 3, %v309_v33 }
  0x58   :  { %v297_v51 = vadd.s32 127, %v296_v48  ;;  %v635_v8 = vand.u32 3, %v309_v33 }
  0x59   :  { %v158_v49 = vmul.f32 %v157_v45, %v155_v37  ;;  %v165_v50 = vmul.f32 %v164_v46, %v155_v37  ;;  %v295_v40 = vor.u32 %v294_v42, %v293_v4  ;;  %v327_v46 = vand.u32 3, %v326_v43 }
  0x5a   :  { %v298_v57 = vshll.u32 %v297_v51, 23  ;;  %vm640_vm4 = vcmp.eq.s32.totalorder %v635_v8, 2  ;;  %vm637_vm7 = vcmp.eq.s32.totalorder %v635_v8, 0  ;;  %vm636_vm8 = vcmp.lt.s32.totalorder %v635_v8, 2 }
  0x5b   :  { %v159_v53 = vadd.f32 -0.4999988, %v158_v49  ;;  %v166_v54 = vadd.f32 -0.16666654, %v165_v50  ;;  %v302_v32 = vcvt.s32.f32 %v295_v40  ;;  %vm332_vm3 = vcmp.eq.s32.totalorder %v327_v46, 2 }
  0x5c   :  { %v299_v63 = vor.u32 4788187, %v298_v57  ;;  %vm328_vm5 = vcmp.lt.s32.totalorder %v327_v46, 2  ;;  %vm329_vm6 = vcmp.eq.s32.totalorder %v327_v46, 0 }
  0x5d   :  { %v160_v59 = vmul.f32 %v159_v53, %v155_v37  ;;  %v167_v21 = vmul.f32 %v166_v54, %v155_v37 }
  0x5e   :  { %v300_v6 = vand.u32 2147483647, %v299_v63 }
  0x5f   :  { %v161_v61 = vadd.f32 1.0, %v160_v59  ;;  %v168_v2 = vadd.f32 1.0, %v167_v21 }
  0x60   :  { %v303_v9 = vmul.f32 %v302_v32, %v300_v6 }
  0x61   :  { %v169_v41 = vmul.f32 %v168_v2, %v153_v28  ;;  %v178_v7 = vxor.u32 2147483648, %v161_v61 }
  0x62   :  { %v304_v14 = vxor.u32 2147483648, %v303_v9 }
  0x63   :  { %v175_v10 = vxor.u32 2147483648, %v169_v41  ;;  %v179_v11 = vsel %vm177_vm10, %v178_v7, %v169_v41  ;;  %v488_v52 = vsel %vm486_vm11, %v178_v7, %v169_v41 }
  0x64   :  { %v305_v19 = vsel %vm184_vm13, %v304_v14, %v303_v9 }
  0x65   :  { %v176_v15 = vsel %vm174_vm14, %v161_v61, %v175_v10  ;;  %v485_v16 = vsel %vm483_vm0, %v161_v61, %v175_v10  ;;  %v308_v30 = vsel %vm1016_vm2, %v867_v1, %v305_v19 }
  0x66   :  { %v180_v17 = vsel %vm173_vm12, %v176_v15, %v179_v11  ;;  %v489_v27 = vsel %vm482_vm15, %v485_v16, %v488_v52  ;;  %v310_v62 = vmul.f32 %v308_v30, %v308_v30 }
  0x67   :  { %v1023_v22 = vsel %vm170_vm1, nan, %v180_v17  ;;  %v1025_v24 = vsel %vm170_vm1, nan, %v489_v27 }
  0x68   :  { %651 = vst [vmem:[#allocation5 + $0x18] sm:$0xff] %v1023_v22  ;;  %v667_v26 = vmul.f32 %v1023_v22, %v865_v0  ;;  %v675_v29 = vmul.f32 %v1025_v24, %v865_v0  ;;  %v687_v31 = vmul.f32 %v1023_v22, %v867_v1  ;;  %v695_v18 = vmul.f32 %v1025_v24, %v867_v1 }
  0x69   :  { %655 = vst [vmem:[#allocation5 + $0x28] sm:$0xff] %v1025_v24  ;;  %v311_v25 = vmul.f32 -0.001358992, %v310_v62  ;;  %v318_v35 = vmul.f32 -0.00019511016, %v310_v62  ;;  %v703_v36 = vmul.f32 %v1023_v22, %v1023_v22  ;;  %v711_v28 = vmul.f32 %v1025_v24, %v1023_v22 }
  0x6a   :  { %669 = vst [vmem:[#allocation5 + $0x48] sm:$0xff] %v667_v26  ;;  %v731_v39 = vmul.f32 %v1025_v24, %v1025_v24 }
  0x6b   :  { %677 = vst [vmem:[#allocation5 + $0x58] sm:$0xff] %v675_v29  ;;  %v312_v37 = vadd.f32 0.041655596, %v311_v25  ;;  %v319_v23 = vadd.f32 0.008332121, %v318_v35 }
  0x6c   :  { %689 = vst [vmem:[#allocation5 + $0x70] sm:$0xff] %v687_v31 }
  0x6d   :  { %697 = vst [vmem:[#allocation5 + $0x80] sm:$0xff] %v695_v18  ;;  %v313_v34 = vmul.f32 %v312_v37, %v310_v62  ;;  %v320_v44 = vmul.f32 %v319_v23, %v310_v62 }
  0x6e   :  { %705 = vst [vmem:[#allocation5 + $0x90] sm:$0xff] %v703_v36 }
  0x6f   :  { %713 = vst [vmem:[#allocation5 + $0xa0] sm:$0xff] %v711_v28  ;;  %v314_v38 = vadd.f32 -0.4999988, %v313_v34  ;;  %v321_v45 = vadd.f32 -0.16666654, %v320_v44 }
  0x70   :  { %733 = vst [vmem:[#allocation5 + $0xc8] sm:$0xff] %v731_v39 }
  0x71   :  { %v315_v4 = vmul.f32 %v314_v38, %v310_v62  ;;  %v322_v47 = vmul.f32 %v321_v45, %v310_v62 }
  0x73   :  { %v316_v48 = vadd.f32 1.0, %v315_v4  ;;  %v323_v49 = vadd.f32 1.0, %v322_v47 }
  0x75   :  { %v324_v50 = vmul.f32 %v323_v49, %v308_v30  ;;  %v333_v42 = vxor.u32 2147483648, %v316_v48 }
  0x77   :  { %v330_v51 = vxor.u32 2147483648, %v324_v50  ;;  %v334_v53 = vsel %vm332_vm3, %v333_v42, %v324_v50  ;;  %v642_v54 = vsel %vm640_vm4, %v333_v42, %v324_v50 }
  0x79   :  { %v331_v40 = vsel %vm329_vm6, %v316_v48, %v330_v51  ;;  %v639_v55 = vsel %vm637_vm7, %v316_v48, %v330_v51 }
  0x7a   :  { %v335_v56 = vsel %vm328_vm5, %v331_v40, %v334_v53  ;;  %v643_v57 = vsel %vm636_vm8, %v639_v55, %v642_v54 }
  0x7b   :  { %v336_v59 = vsel %vm325_vm9, nan, %v335_v56  ;;  %v644_v21 = vsel %vm325_vm9, nan, %v643_v57 }
  0x7c   :  { %653 = vst [vmem:[#allocation5 + $0x20] sm:$0xff] %v336_v59  ;;  %v671_v32 = vmul.f32 %v336_v59, %v865_v0  ;;  %v679_v58 = vmul.f32 %v644_v21, %v865_v0  ;;  %v691_v63 = vmul.f32 %v336_v59, %v867_v1  ;;  %v699_v20 = vmul.f32 %v644_v21, %v867_v1 }
  0x7d   :  { %657 = vst [vmem:[#allocation5 + $0x30] sm:$0xff] %v644_v21  ;;  %v707_v60 = vmul.f32 %v336_v59, %v1023_v22  ;;  %v715_v61 = vmul.f32 %v644_v21, %v1023_v22  ;;  %v719_v2 = vmul.f32 %v336_v59, %v336_v59  ;;  %v723_v3 = vmul.f32 %v1025_v24, %v336_v59 }
  0x7e   :  { %673 = vst [vmem:[#allocation5 + $0x50] sm:$0xff] %v671_v32  ;;  %v727_v6 = vmul.f32 %v644_v21, %v336_v59  ;;  %v735_v0 = vmul.f32 %v644_v21, %v1025_v24  ;;  %v739_v1 = vmul.f32 %v644_v21, %v644_v21 }
  0x7f   :  { %681 = vst [vmem:[#allocation5 + $0x60] sm:$0xff] %v679_v58 }
  0x80   :  { %693 = vst [vmem:[#allocation5 + $0x78] sm:$0xff] %v691_v63 }
  0x81   :  { %701 = vst [vmem:[#allocation5 + $0x88] sm:$0xff] %v699_v20 }
  0x82   :  { %709 = vst [vmem:[#allocation5 + $0x98] sm:$0xff] %v707_v60 }
  0x83   :  { %717 = vst [vmem:[#allocation5 + $0xa8] sm:$0xff] %v715_v61 }
  0x84   :  { %721 = vst [vmem:[#allocation5 + $0xb0] sm:$0xff] %v719_v2 }
  0x85   :  { %725 = vst [vmem:[#allocation5 + $0xb8] sm:$0xff] %v723_v3 }
  0x86   :  { %729 = vst [vmem:[#allocation5 + $0xc0] sm:$0xff] %v727_v6 }
  0x87   :  { %737 = vst [vmem:[#allocation5 + $0xd0] sm:$0xff] %v735_v0 }
  0x88   :  { %741 = vst [vmem:[#allocation5 + $0xd8] sm:$0xff] %v739_v1 }
  0x89   :  { %754 = dma.vmem_to_hbm [thread:$0]  %s747_s13, 3584, %s749_s16, [#allocation4], %s838_s11, %s838_s11, %s839_s12  }
  0x8a   :  { %835 = dma.done.wait [#allocation4], 3584  }
  0x8b   :  { %836 = vsyncadd [#allocation4], 4294963712 }
  0x8c   :  { %759 = vsyncpa [#allocation3], 1 }
  0x8d   :  { %760 = vsyncpa [#allocation4], 1 }

</bundles_post_ra>
